<compile_context>
chip_gen: v7x
topology: tpu7x:2x2x1
jax: 0.10.0
libtpu: 0.0.40
codegen_flags: <defaults>
</compile_context>

<pallas_src>
import math

import jax
import jax.numpy as jnp
from jax.experimental import pallas as pl
from jax.experimental.pallas import tpu as pltpu


def _round_up(a, b):
    return (a + b - 1) // b * b


def _cdiv(a, b):
    return -(-a // b)


# ----------------------------------------------------------------------------
# kernels
# ----------------------------------------------------------------------------
def ff_kernel_f32out(x_ref, w1_ref, b1_ref, w2_ref, b2_ref, out_ref):
    """One (row-tile, hidden-tile) step of y = relu(x @ W1 + b1) @ W2 + b2.

    grid = (row_tiles, hidden_tiles); the hidden axis is the reduction axis of
    the second matmul.  The f32 output block is resident across it and doubles
    as the accumulator (no separate scratch).
    """
    j = pl.program_id(1)

    # bf16 MXU operands (x already bf16), f32 accumulation; bias + ReLU in f32.
    h = jnp.dot(x_ref[...], w1_ref[...], preferred_element_type=jnp.float32)
    h = jnp.maximum(h + b1_ref[...], 0.0)
    part = jnp.dot(h.astype(jnp.bfloat16), w2_ref[...],
                   preferred_element_type=jnp.float32)

    @pl.when(j == 0)
    def _init():
        out_ref[...] = part + b2_ref[...]

    @pl.when(j > 0)
    def _accum():
        out_ref[...] += part


def ff_kernel_scratch(x_ref, w1_ref, b1_ref, w2_ref, b2_ref, out_ref, acc_ref):
    """Same computation, but accumulates into an f32 VMEM scratch so the
    output can be a narrower dtype (e.g. bf16)."""
    j = pl.program_id(1)

    @pl.when(j == 0)
    def _init():
        acc_ref[...] = jnp.zeros_like(acc_ref)

    h = jnp.dot(x_ref[...], w1_ref[...], preferred_element_type=jnp.float32)
    h = jnp.maximum(h + b1_ref[...], 0.0)
    acc_ref[...] += jnp.dot(h.astype(jnp.bfloat16), w2_ref[...],
                            preferred_element_type=jnp.float32)

    @pl.when(j == pl.num_programs(1) - 1)
    def _finalize():
        out_ref[...] = (acc_ref[...] + b2_ref[...]).astype(out_ref.dtype)


# ----------------------------------------------------------------------------
# tile planning
# ----------------------------------------------------------------------------
def _device_defaults():
    """(block_rows, min_row_tiles) tuned per TPU generation."""
    try:
        kind = jax.devices()[0].device_kind.lower()
    except Exception:
        kind = ""
    if "v5 lite" in kind or "v5e" in kind or "v5litepod" in kind:
        return 256, 1          # v5e: ~roofline knee at tm=256
    if "v7" in kind:
        return 512, 2          # v7x: 2 TCs/chip -> keep >=2 row tiles
    return 512, 1              # v6e / others: weight-stream bound below tm~512


def _plan_tiles(m, d_in, hidden, block_rows, min_row_tiles, block_hidden,
                out_bytes, use_scratch, budget):
    """Pick (tm, m_pad, th, h_pad, vmem_need) under the VMEM budget."""
    th = min(block_hidden, _round_up(hidden, 128))   # lane-dense hidden tile
    br = max(64, _round_up(block_rows, 8))

    def vmem_need(tm_, th_):
        x = 2 * tm_ * d_in * 2                      # bf16 x, double-buffered
        w = 2 * (d_in * th_ + th_ * d_in) * 2       # bf16 W1 + W2, double-buffered
        b = 2 * (th_ + d_in) * 4                    # f32 biases
        out = 2 * tm_ * d_in * out_bytes            # output, double-buffered
        acc = tm_ * d_in * 4 if use_scratch else 0  # f32 accumulator scratch
        return x + w + b + out + acc

    while True:
        n_row = max(min_row_tiles, _cdiv(m, br))
        tm = _round_up(_cdiv(m, n_row), 8)
        need = vmem_need(tm, th)
        if need <= budget or (br <= 64 and th <= 128):
            break
        if br > 64:
            br = max(64, _round_up(br // 2, 8))
        else:
            th = max(128, (th // 2) // 128 * 128)

    h_pad = _round_up(hidden, th)
    m_pad = n_row * tm
    return tm, m_pad, th, h_pad, need


# ----------------------------------------------------------------------------
# wrapper
# ----------------------------------------------------------------------------
def feed_forward(x, w1, b1, w2, b2, *, block_rows=None, block_hidden=512,
                 vmem_budget_bytes=48 << 20):
    """y = relu(x @ w1 + b1) @ w2 + b2 for x of shape (..., in_size).

    Weights are stored pre-transposed as (in, out), equivalent to PyTorch's
    x @ W.T + b.
    """
    orig_shape = x.shape
    d_in, hidden = w1.shape
    assert orig_shape[-1] == d_in and w2.shape == (hidden, d_in)
    assert block_hidden % 128 == 0

    dflt_rows, min_row_tiles = _device_defaults()
    if block_rows is None:
        block_rows = dflt_rows
    assert block_rows % 8 == 0

    out_dtype = x.dtype
    out_bytes = jnp.dtype(out_dtype).itemsize
    use_scratch = jnp.dtype(out_dtype) != jnp.dtype(jnp.float32)

    x2 = x.reshape(-1, d_in)
    m = x2.shape[0]

    tm, m_pad, th, h_pad, need = _plan_tiles(
        m, d_in, hidden, block_rows, min_row_tiles, block_hidden,
        out_bytes, use_scratch, vmem_budget_bytes)

    # bf16 activations once (no per-step recast in the kernel), pad rows.
    x2 = x2.astype(jnp.bfloat16)
    if m_pad != m:
        x2 = jnp.pad(x2, ((0, m_pad - m), (0, 0)))

    # bf16 weights; zero-pad the hidden dim (numerically exact: relu(0) = 0).
    w1b = w1.astype(jnp.bfloat16)
    w2b = w2.astype(jnp.bfloat16)
    b1f = b1.reshape(1, hidden).astype(jnp.float32)
    b2f = b2.reshape(1, d_in).astype(jnp.float32)
    if h_pad != hidden:
        pad_h = h_pad - hidden
        w1b = jnp.pad(w1b, ((0, 0), (0, pad_h)))
        b1f = jnp.pad(b1f, ((0, 0), (0, pad_h)))
        w2b = jnp.pad(w2b, ((0, pad_h), (0, 0)))

    grid = (m_pad // tm, h_pad // th)

    in_specs = [
        pl.BlockSpec((tm, d_in), lambda i, j: (i, 0)),   # x row tile (bf16)
        pl.BlockSpec((d_in, th), lambda i, j: (0, j)),   # W1 hidden-col tile
        pl.BlockSpec((1, th), lambda i, j: (0, j)),      # b1 tile
        pl.BlockSpec((th, d_in), lambda i, j: (j, 0)),   # W2 hidden-row tile
        pl.BlockSpec((1, d_in), lambda i, j: (0, 0)),    # b2 (grid-invariant)
    ]
    out_spec = pl.BlockSpec((tm, d_in), lambda i, j: (i, 0))

    vmem_limit = min(need + max(need // 4, 2 << 20), 96 << 20)
    cparams = pltpu.CompilerParams(
        dimension_semantics=("parallel", "arbitrary"),
        vmem_limit_bytes=vmem_limit)

    if use_scratch:
        out = pl.pallas_call(
            ff_kernel_scratch,
            out_shape=jax.ShapeDtypeStruct((m_pad, d_in), out_dtype),
            grid=grid,
            in_specs=in_specs,
            out_specs=out_spec,
            scratch_shapes=[pltpu.VMEM((tm, d_in), jnp.float32)],
            compiler_params=cparams,
        )(x2, w1b, b1f, w2b, b2f)
    else:
        out = pl.pallas_call(
            ff_kernel_f32out,
            out_shape=jax.ShapeDtypeStruct((m_pad, d_in), out_dtype),
            grid=grid,
            in_specs=in_specs,
            out_specs=out_spec,
            compiler_params=cparams,
        )(x2, w1b, b1f, w2b, b2f)

    return out[:m].reshape(orig_shape)


# ----------------------------------------------------------------------------
# deterministic parameter initialization (PyTorch nn.Linear default ranges)
# ----------------------------------------------------------------------------
def init_feed_forward_params(key, in_size, hidden_size):
    k1, k2, k3, k4 = jax.random.split(key, 4)
    bound1 = 1.0 / math.sqrt(in_size)
    w1 = jax.random.uniform(k1, (in_size, hidden_size), jnp.float32, -bound1, bound1)
    b1 = jax.random.uniform(k2, (hidden_size,), jnp.float32, -bound1, bound1)
    bound2 = 1.0 / math.sqrt(hidden_size)
    w2 = jax.random.uniform(k3, (hidden_size, in_size), jnp.float32, -bound2, bound2)
    b2 = jax.random.uniform(k4, (in_size,), jnp.float32, -bound2, bound2)
    return w1, b1, w2, b2


# pure-JAX reference with the same numerics (bf16 operands, f32 accumulation)
def feed_forward_ref(x, w1, b1, w2, b2):
    h = jnp.dot(x.astype(jnp.bfloat16), w1.astype(jnp.bfloat16),
                preferred_element_type=jnp.float32) + b1
    h = jnp.maximum(h, 0.0)
    return jnp.dot(h.astype(jnp.bfloat16), w2.astype(jnp.bfloat16),
                   preferred_element_type=jnp.float32) + b2


# ----------------------------------------------------------------------------
if __name__ == "__main__":
    B, S, D_IN, HIDDEN = 4, 16, 128, 256

    root = jax.random.PRNGKey(0)
    kx, kp = jax.random.split(root)
    x = jax.random.normal(kx, (B, S, D_IN), jnp.float32)
    w1, b1, w2, b2 = init_feed_forward_params(kp, D_IN, HIDDEN)

    # f32 output path (output block is the accumulator)
    out = jax.block_until_ready(feed_forward(x, w1, b1, w2, b2))
    ref = feed_forward_ref(x, w1, b1, w2, b2)
    assert out.shape == x.shape
    assert bool(jnp.all(jnp.isfinite(out)))
    assert bool(jnp.allclose(out, ref, atol=2e-3, rtol=2e-3))

    # bf16 output path (exercises the scratch-accumulator kernel)
    xb = x.astype(jnp.bfloat16)
    out_b = jax.block_until_ready(feed_forward(xb, w1, b1, w2, b2))
    ref_b = feed_forward_ref(xb, w1, b1, w2, b2)
    assert out_b.shape == x.shape and out_b.dtype == jnp.bfloat16
    assert bool(jnp.all(jnp.isfinite(out_b.astype(jnp.float32))))
    assert bool(jnp.allclose(out_b.astype(jnp.float32), ref_b,
                             atol=2e-2, rtol=2e-2))

    print("KERNEL_OK")
</pallas_src>

<mosaic_0001>
module attributes {stable_mosaic.version = 11 : i64} {
  func.func @ff_kernel_f32out(%arg0: i32, %arg1: i32, %arg2: memref<64x128xbf16, #tpu.memory_space<vmem>>, %arg3: memref<128x256xbf16, #tpu.memory_space<vmem>>, %arg4: memref<1x256xf32, #tpu.memory_space<vmem>>, %arg5: memref<256x128xbf16, #tpu.memory_space<vmem>>, %arg6: memref<1x128xf32, #tpu.memory_space<vmem>>, %arg7: memref<64x128xf32, #tpu.memory_space<vmem>>) attributes {dimension_semantics = [#tpu.dimension_semantics<parallel>, #tpu.dimension_semantics<arbitrary>], iteration_bounds = array<i64: 1, 1>, scalar_prefetch = 0 : i64, scratch_operands = 0 : i64, tpu.core_type = #tpu.core_type<tc>, window_params = [{transform_indices = @transform_0, window_bounds = array<i64: 64, 128>}, {transform_indices = @transform_1, window_bounds = array<i64: 128, 256>}, {transform_indices = @transform_2, window_bounds = array<i64: 1, 256>}, {transform_indices = @transform_3, window_bounds = array<i64: 256, 128>}, {pipeline_mode = #tpu.pipeline_mode<synchronous>, transform_indices = @transform_4, window_bounds = array<i64: 1, 128>}, {transform_indices = @transform_5, window_bounds = array<i64: 64, 128>}]} {
    %c0 = arith.constant 0 : index
    %c0_0 = arith.constant 0 : index
    %0 = vector.load %arg2[%c0, %c0_0] : memref<64x128xbf16, #tpu.memory_space<vmem>>, vector<64x128xbf16>
    %c0_1 = arith.constant 0 : index
    %c0_2 = arith.constant 0 : index
    %1 = vector.load %arg3[%c0_1, %c0_2] : memref<128x256xbf16, #tpu.memory_space<vmem>>, vector<128x256xbf16>
    %cst = arith.constant dense<0.000000e+00> : vector<64x256xf32>
    %2 = tpu.matmul %0, %1, %cst {dimension_numbers = #tpu.dot_dimension_numbers<[1], [0], [0], [1], [0, 0, 1, 1], [], []>} : vector<64x128xbf16>, vector<128x256xbf16>, vector<64x256xf32> -> vector<64x256xf32>
    %c0_3 = arith.constant 0 : index
    %c0_4 = arith.constant 0 : index
    %3 = vector.load %arg4[%c0_3, %c0_4] : memref<1x256xf32, #tpu.memory_space<vmem>>, vector<1x256xf32>
    %4 = vector.broadcast %3 : vector<1x256xf32> to vector<64x256xf32>
    %5 = arith.addf %2, %4 : vector<64x256xf32>
    %cst_5 = arith.constant 0.000000e+00 : f32
    %6 = vector.broadcast %cst_5 : f32 to vector<64x256xf32>
    %7 = arith.maximumf %5, %6 : vector<64x256xf32>
    %8 = arith.truncf %7 : vector<64x256xf32> to vector<64x256xbf16>
    %c0_6 = arith.constant 0 : index
    %c0_7 = arith.constant 0 : index
    %9 = vector.load %arg5[%c0_6, %c0_7] : memref<256x128xbf16, #tpu.memory_space<vmem>>, vector<256x128xbf16>
    %cst_8 = arith.constant dense<0.000000e+00> : vector<64x128xf32>
    %10 = tpu.matmul %8, %9, %cst_8 {dimension_numbers = #tpu.dot_dimension_numbers<[1], [0], [0], [1], [0, 0, 1, 1], [], []>} : vector<64x256xbf16>, vector<256x128xbf16>, vector<64x128xf32> -> vector<64x128xf32>
    %c0_i32 = arith.constant 0 : i32
    %11 = arith.cmpi eq, %arg1, %c0_i32 : i32
    %12 = arith.extui %11 : i1 to i32
    %c0_i32_9 = arith.constant 0 : i32
    %13 = arith.cmpi ne, %12, %c0_i32_9 : i32
    scf.if %13 {
      %c0_12 = arith.constant 0 : index
      %c0_13 = arith.constant 0 : index
      %17 = vector.load %arg6[%c0_12, %c0_13] : memref<1x128xf32, #tpu.memory_space<vmem>>, vector<1x128xf32>
      %18 = vector.broadcast %17 : vector<1x128xf32> to vector<64x128xf32>
      %19 = arith.addf %10, %18 : vector<64x128xf32>
      %c0_14 = arith.constant 0 : index
      %c0_15 = arith.constant 0 : index
      %20 = vector.load %arg7[%c0_14, %c0_15] : memref<64x128xf32, #tpu.memory_space<vmem>>, vector<64x128xf32>
      tpu.vector_store %arg7[%c0_14, %c0_15], %19 {strides = array<i32>} : memref<64x128xf32, #tpu.memory_space<vmem>>, vector<64x128xf32>,
    } else {
    }
    %c0_i32_10 = arith.constant 0 : i32
    %14 = arith.cmpi sgt, %arg1, %c0_i32_10 : i32
    %15 = arith.extui %14 : i1 to i32
    %c0_i32_11 = arith.constant 0 : i32
    %16 = arith.cmpi ne, %15, %c0_i32_11 : i32
    scf.if %16 {
      %c0_12 = arith.constant 0 : index
      %c0_13 = arith.constant 0 : index
      %17 = vector.load %arg7[%c0_12, %c0_13] : memref<64x128xf32, #tpu.memory_space<vmem>>, vector<64x128xf32>
      %18 = arith.addf %17, %10 : vector<64x128xf32>
      %c0_14 = arith.constant 0 : index
      %c0_15 = arith.constant 0 : index
      %19 = vector.load %arg7[%c0_14, %c0_15] : memref<64x128xf32, #tpu.memory_space<vmem>>, vector<64x128xf32>
      tpu.vector_store %arg7[%c0_14, %c0_15], %18 {strides = array<i32>} : memref<64x128xf32, #tpu.memory_space<vmem>>, vector<64x128xf32>,
    } else {
    }
    return
  }
  func.func @transform_0(%arg0: i32, %arg1: i32) -> (i32, i32) {
    %c0_i32 = arith.constant 0 : i32
    %c0_i32_0 = arith.constant 0 : i32
    return %arg0, %c0_i32 : i32, i32
  }
  func.func @transform_1(%arg0: i32, %arg1: i32) -> (i32, i32) {
    %c0_i32 = arith.constant 0 : i32
    %c0_i32_0 = arith.constant 0 : i32
    return %c0_i32, %arg1 : i32, i32
  }
  func.func @transform_2(%arg0: i32, %arg1: i32) -> (i32, i32) {
    %c0_i32 = arith.constant 0 : i32
    %c0_i32_0 = arith.constant 0 : i32
    return %c0_i32, %arg1 : i32, i32
  }
  func.func @transform_3(%arg0: i32, %arg1: i32) -> (i32, i32) {
    %c0_i32 = arith.constant 0 : i32
    %c0_i32_0 = arith.constant 0 : i32
    return %arg1, %c0_i32 : i32, i32
  }
  func.func @transform_4(%arg0: i32, %arg1: i32) -> (i32, i32) {
    %c0_i32 = arith.constant 0 : i32
    %c0_i32_0 = arith.constant 0 : i32
    %c0_i32_1 = arith.constant 0 : i32
    return %c0_i32, %c0_i32_0 : i32, i32
  }
  func.func @transform_5(%arg0: i32, %arg1: i32) -> (i32, i32) {
    %c0_i32 = arith.constant 0 : i32
    %c0_i32_0 = arith.constant 0 : i32
    return %arg0, %c0_i32 : i32, i32
  }
}

</mosaic_0001>

<bundles_post_ra>
// kernel: tpu_custom_call.1
= control target key start
LH: loop header
LB: loop body
LE: loop exit
PB: predicated region body
PF: predicated region fallthrough
CT: control target
= control target key end

     0   :  { %10 = vsyncpa [#allocation3], 0  ;;  %s893_s0 = inlined_call_operand.hbm [shape: bf16[64,128], index: 0, kind: input, shape index: {}]   ;;  %s894_s1 = inlined_call_operand.hbm [shape: bf16[128,256], index: 1, kind: input, shape index: {}]   ;;  %s895_s2 = inlined_call_operand.vmem [shape: f32[1,256], index: 2, kind: input, shape index: {}]   ;;  %s896_s3 = inlined_call_operand.hbm [shape: bf16[256,128], index: 3, kind: input, shape index: {}]   ;;  %s897_s4 = inlined_call_operand.vmem [shape: f32[1,128], index: 4, kind: input, shape index: {}]   ;;  %s898_s5 = inlined_call_operand.hbm [shape: f32[64,128], index: 5, kind: output, shape index: {}]  }
   0x1   :  { %11 = vsyncpa [#allocation6], 0 }
   0x2   :  { %12 = vsyncpa [#allocation4], 0  ;;  %s790_s18 = smov [#allocation5]   ;;  %s696_s22 = scalar_lea.hbm %s894_s1, 2048 }
   0x3   :  { %s30_s19 = sshll.u32 %s790_s18, 4  ;;  %p697_p0 = scmp.ne.s32.totalorder %s894_s1, %s696_s22  ;;  %s31_s19 = int_to_ptr.vmem [resolvable:$true] %s30_s19 }
   0x4   :  { %p700_p1 = scmp.lt.u32.totalorder %s696_s22, %s894_s1 }
   0x6   :  { %p702_p2 = pnand %p700_p1, %p697_p0 }
   0x8   :  { %705 = shalt.err (!%p702_p2)
}
   0x9   :  { %s706_s27 = scalar_lea.vmem %s31_s19, 2048  ;;  %p711_p4 = scmp.lt.s32.totalorder %s31_s19, %s31_s19 }
   0xa   :  { %p707_p3 = scmp.ne.s32.totalorder %s31_s19, %s706_s27  ;;  %p712_p5 = scmp.lt.s32.totalorder %s706_s27, %s706_s27 }
   0xc   :  { %p713_p6 = por %p712_p5, %p711_p4 }
   0xe   :  { %p714_p7 = pnand %p713_p6, %p707_p3 }
  0x10   :  { %717 = shalt.err (!%p714_p7)
}
  0x11   :  { %s791_s28 = smov 128   ;;  %s792_s29 = smov 8  }
  0x12   :  { %36 = dma.hbm_to_vmem [thread:$0]  %s894_s1, 2048, %s31_s19, [#allocation6], %s791_s28, %s791_s28, %s792_s29  }
  0x13   :  { %s793_s7 = smov [#allocation2]   ;;  %s718_s11 = scalar_lea.hbm %s893_s0, 512 }
  0x14   :  { %s18_s8 = sshll.u32 %s793_s7, 4  ;;  %p719_p8 = scmp.ne.s32.totalorder %s893_s0, %s718_s11  ;;  %s19_s8 = int_to_ptr.vmem [resolvable:$true] %s18_s8 }
  0x15   :  { %p722_p9 = scmp.lt.u32.totalorder %s718_s11, %s893_s0 }
  0x17   :  { %p724_p10 = pnand %p722_p9, %p719_p8 }
  0x19   :  { %727 = shalt.err (!%p724_p10)
}
  0x1a   :  { %s728_s16 = scalar_lea.vmem %s19_s8, 512  ;;  %p733_p12 = scmp.lt.s32.totalorder %s19_s8, %s19_s8 }
  0x1b   :  { %p729_p11 = scmp.ne.s32.totalorder %s19_s8, %s728_s16  ;;  %p734_p13 = scmp.lt.s32.totalorder %s728_s16, %s728_s16 }
  0x1d   :  { %p735_p0 = por %p734_p13, %p733_p12 }
  0x1f   :  { %p736_p1 = pnand %p735_p0, %p729_p11 }
  0x21   :  { %739 = shalt.err (!%p736_p1)
}
  0x22   :  { %s794_s1 = smov 64   ;;  %s795_s17 = smov 4  }
  0x23   :  { %24 = dma.hbm_to_vmem [thread:$0]  %s893_s0, 512, %s19_s8, [#allocation3], %s794_s1, %s794_s1, %s795_s17  }
  0x24   :  { %s796_s20 = smov [#allocation7]   ;;  %s740_s24 = scalar_lea.hbm %s896_s3, 2048 }
  0x25   :  { %s44_s21 = sshll.u32 %s796_s20, 4  ;;  %p741_p2 = scmp.ne.s32.totalorder %s896_s3, %s740_s24  ;;  %s45_s21 = int_to_ptr.vmem [resolvable:$true] %s44_s21 }
  0x26   :  { %p744_p3 = scmp.lt.u32.totalorder %s740_s24, %s896_s3 }
  0x28   :  { %p746_p4 = pnand %p744_p3, %p741_p2 }
  0x2a   :  { %749 = shalt.err (!%p746_p4)
}
  0x2b   :  { %s750_s6 = scalar_lea.vmem %s45_s21, 2048  ;;  %p755_p6 = scmp.lt.s32.totalorder %s45_s21, %s45_s21 }
  0x2c   :  { %p751_p5 = scmp.ne.s32.totalorder %s45_s21, %s750_s6  ;;  %p756_p7 = scmp.lt.s32.totalorder %s750_s6, %s750_s6 }
  0x2e   :  { %p757_p8 = por %p756_p7, %p755_p6 }
  0x30   :  { %p758_p9 = pnand %p757_p8, %p751_p5 }
  0x32   :  { %761 = shalt.err (!%p758_p9)
}
  0x33   :  { %50 = dma.hbm_to_vmem [thread:$0]  %s896_s3, 2048, %s45_s21, [#allocation6], %s794_s1, %s794_s1, %s795_s17  }
  0x34   :  { %784 = dma.done.wait [#allocation3], 512  }
  0x35   :  { %785 = vsyncadd [#allocation3], 4294966784 }
  0x36   :  { %786 = dma.done.wait [#allocation6], 4096  }
  0x37   :  { %787 = vsyncadd [#allocation6], 4294963200  ;;  %v797_v0 = vmov 0   ;;  %v652_v1 = vld [vmem:[#allocation5 + $0x4] ss:$8 sps:$4 sm:$0xff]   ;;  %v684_v17 = vld [vmem:[#allocation7 + $0x50] sm:$0xff]   ;;  %v89_v37 = vlaneseq }
  0x38   :  { %235 = vmatprep.mubr.bf16.mxu0 %v797_v0  ;;  %v654_v2 = vld [vmem:[#allocation5] ss:$8 sps:$4 sm:$0xff]   ;;  %203 = vmatprep.subr.bf16.mxu0 %v652_v1  ;;  %v655_v3 = vld [vmem:[#allocation5 + $0x14] ss:$8 sps:$4 sm:$0xff]   ;;  %v657_v4 = vld [vmem:[#allocation5 + $0x10] ss:$8 sps:$4 sm:$0xff]  }
  0x39   :  { %204 = vmatpush1.bf16.msra.mxu0 %v654_v2  ;;  %v658_v5 = vld [vmem:[#allocation5 + $0x24] ss:$8 sps:$4 sm:$0xff]   ;;  %v660_v6 = vld [vmem:[#allocation5 + $0x20] ss:$8 sps:$4 sm:$0xff]   ;;  %v661_v7 = vld [vmem:[#allocation5 + $0x34] ss:$8 sps:$4 sm:$0xff]  }
  0x3a   :  { %205 = vmatprep.subr.bf16.mxu0 %v655_v3  ;;  %v663_v8 = vld [vmem:[#allocation5 + $0x30] ss:$8 sps:$4 sm:$0xff]   ;;  %v664_v9 = vld [vmem:[#allocation5 + $0x44] ss:$8 sps:$4 sm:$0xff]   ;;  %v666_v10 = vld [vmem:[#allocation5 + $0x40] ss:$8 sps:$4 sm:$0xff]  }
  0x3b   :  { %v667_v11 = vld [vmem:[#allocation5 + $0x54] ss:$8 sps:$4 sm:$0xff]   ;;  %v680_v12 = vld [vmem:[#allocation7 + $0x40] sm:$0xff]   ;;  %v669_v14 = vld [vmem:[#allocation5 + $0x50] ss:$8 sps:$4 sm:$0xff]   ;;  %v90_v38 = vshrl.u32 %v89_v37, 7 }
  0x3c   :  { %v681_v13 = vld [vmem:[#allocation7] sm:$0xff]   ;;  %603 = vmatprep.subr.bf16.mxu1 %v680_v12  ;;  %v682_v15 = vld [vmem:[#allocation7 + $0x48] sm:$0xff]   ;;  %v685_v20 = vld [vmem:[#allocation7 + $0x10] sm:$0xff]  }
  0x3d   :  { %206 = vmatpush1.bf16.msra.mxu0 %v657_v4  ;;  %604 = vmatpush3.bf16.msra.mxu1 %v681_v13  ;;  %v683_v16 = vld [vmem:[#allocation7 + $0x8] sm:$0xff]   ;;  %v686_v21 = vld [vmem:[#allocation7 + $0x58] sm:$0xff]   ;;  %v688_v25 = vld [vmem:[#allocation7 + $0x60] sm:$0xff]   ;;  %v91_v39 = vsub.s32 0, %v90_v38  ;;  %v95_v41 = vsub.s32 1, %v90_v38 }
  0x3e   :  { %207 = vmatprep.subr.bf16.mxu0 %v658_v5  ;;  %605 = vmatprep.subr.bf16.mxu1 %v682_v15  ;;  %v670_v18 = vld [vmem:[#allocation5 + $0x64] ss:$8 sps:$4 sm:$0xff]   ;;  %v672_v19 = vld [vmem:[#allocation5 + $0x60] ss:$8 sps:$4 sm:$0xff]   ;;  %v673_v22 = vld [vmem:[#allocation5 + $0x74] ss:$8 sps:$4 sm:$0xff]  }
  0x3f   :  { %v675_v23 = vld [vmem:[#allocation5 + $0x70] ss:$8 sps:$4 sm:$0xff]   ;;  %v676_v26 = vld [vmem:[#allocation2] sm:$0xff]   ;;  %v690_v28 = vld [vmem:[#allocation7 + $0x68] sm:$0xff]  }
  0x40   :  { %v687_v24 = vld [vmem:[#allocation7 + $0x18] sm:$0xff]   ;;  %v689_v27 = vld [vmem:[#allocation7 + $0x20] sm:$0xff]   ;;  %v677_v29 = vld [vmem:[#allocation2 + $0x8] sm:$0xff]  }
  0x41   :  { %208 = vmatpush1.bf16.msra.mxu0 %v660_v6  ;;  %606 = vmatpush3.bf16.msra.mxu1 %v683_v16  ;;  %v678_v30 = vld [vmem:[#allocation2 + $0x10] sm:$0xff]   ;;  %v679_v31 = vld [vmem:[#allocation2 + $0x18] sm:$0xff]   ;;  %v691_v32 = vld [vmem:[#allocation7 + $0x28] sm:$0xff]  }
  0x42   :  { %209 = vmatprep.subr.bf16.mxu0 %v661_v7  ;;  %607 = vmatprep.subr.bf16.mxu1 %v684_v17  ;;  %v692_v33 = vld [vmem:[#allocation7 + $0x70] sm:$0xff]   ;;  %v694_v35 = vld [vmem:[#allocation7 + $0x78] sm:$0xff]   ;;  %v87_v40 = vld [vmem:[%s895_s2] sm:$0x3] }
  0x43   :  { %v693_v34 = vld [vmem:[#allocation7 + $0x30] sm:$0xff]   ;;  %v695_v36 = vld [vmem:[#allocation7 + $0x38] sm:$0xff]   ;;  %v92_v42 = vrot.slane %v87_v40, %v91_v39  ;;  %v96_v43 = vrot.slane %v87_v40, %v95_v41  ;;  %v602_v38 = vld [vmem:[%s897_s4] ss:$0 sm:$0xff]  ;;  %s798_s4 = smov [#allocation8]  }
  0x44   :  { %s553_s10 = sshll.u32 %s798_s4, 4  ;;  %s554_s10 = int_to_ptr.vmem [resolvable:$true] %s553_s10 }
  0x45   :  { %210 = vmatpush1.bf16.msra.mxu0 %v663_v8  ;;  %608 = vmatpush3.bf16.msra.mxu1 %v685_v20  ;;  %s762_s11 = scalar_lea.vmem %s554_s10, 1024  ;;  %p767_p11 = scmp.lt.s32.totalorder %s554_s10, %s554_s10 }
  0x46   :  { %211 = vmatprep.subr.bf16.mxu0 %v664_v9  ;;  %609 = vmatprep.subr.bf16.mxu1 %v686_v21  ;;  %p763_p10 = scmp.ne.s32.totalorder %s554_s10, %s762_s11  ;;  %p768_p12 = scmp.lt.s32.totalorder %s762_s11, %s762_s11 }
  0x48   :  { %p769_p13 = por %p768_p12, %p767_p11 }
  0x49   :  { %212 = vmatpush1.bf16.msra.mxu0 %v666_v10  ;;  %610 = vmatpush3.bf16.msra.mxu1 %v687_v24 }
  0x4a   :  { %213 = vmatprep.subr.bf16.mxu0 %v667_v11  ;;  %611 = vmatprep.subr.bf16.mxu1 %v688_v25  ;;  %p770_p0 = pnand %p769_p13, %p763_p10 }
  0x4d   :  { %214 = vmatpush1.bf16.msra.mxu0 %v669_v14  ;;  %612 = vmatpush3.bf16.msra.mxu1 %v689_v27 }
  0x4e   :  { %215 = vmatprep.subr.bf16.mxu0 %v670_v18  ;;  %613 = vmatprep.subr.bf16.mxu1 %v690_v28 }
  0x51   :  { %216 = vmatpush1.bf16.msra.mxu0 %v672_v19  ;;  %614 = vmatpush3.bf16.msra.mxu1 %v691_v32 }
  0x52   :  { %217 = vmatprep.subr.bf16.mxu0 %v673_v22  ;;  %615 = vmatprep.subr.bf16.mxu1 %v692_v33 }
  0x55   :  { %218 = vmatpush1.bf16.msra.mxu0 %v675_v23  ;;  %616 = vmatpush3.bf16.msra.mxu1 %v693_v34 }
  0x56   :  { %617 = vmatprep.subr.bf16.mxu1 %v694_v35 }
  0x58   :  { %236 = vmatmul.mubr.bf16.vlgmr.msra.gmra.mrb[0].mxu0 %v676_v26 }
  0x59   :  { %245 = vmatprep.mubr.bf16.mxu0 %v797_v0  ;;  %618 = vmatpush3.bf16.msra.mxu1 %v695_v36 }
  0x60   :  { %246 = vmatmul.mubr.bf16.gmra.mrb[4].mxu0 %v677_v29 }
  0x61   :  { %255 = vmatprep.mubr.bf16.mxu0 %v797_v0 }
  0x68   :  { %256 = vmatmul.mubr.bf16.gmra.mrb[8].mxu0 %v678_v30 }
  0x69   :  { %265 = vmatprep.mubr.bf16.mxu0 %v797_v0 }
  0x70   :  { %266 = vmatmul.mubr.bf16.gmra.mrb[12].mxu0 %v679_v31 }
 0x12b   :  { %v237_v44 = vpop.f32.mrb[0].mxu0 }
 0x12c   :  { %v238_v45 = vadd.f32 %v237_v44, %v92_v42  ;;  %v239_v46 = vpop.f32.mrb[1].mxu0 }
 0x12d   :  { %v240_v47 = vadd.f32 %v239_v46, %v96_v43  ;;  %v241_v48 = vpop.f32.mrb[2].mxu0 }
 0x12e   :  { %v242_v49 = vadd.f32 %v241_v48, %v92_v42  ;;  %v243_v50 = vpop.f32.mrb[3].mxu0  ;;  %v276_v52 = vmax.f32 %v238_v45, 0.0 }
 0x12f   :  { %v244_v51 = vadd.f32 %v243_v50, %v96_v43  ;;  %v277_v54 = vmax.f32 %v240_v47, 0.0 }
 0x130   :  { %v278_v53 = vmax.f32 %v242_v49, 0.0 }
 0x131   :  { %v279_v55 = vmax.f32 %v244_v51, 0.0 }
 0x132   :  { %v292_v56 = vpack.c.bf16 %v278_v53, %v276_v52 }
 0x133   :  { %v247_v57 = vpop.f32.mrb[4].mxu0  ;;  %v293_v58 = vpack.c.bf16 %v279_v55, %v277_v54 }
 0x134   :  { %v248_v59 = vadd.f32 %v247_v57, %v92_v42  ;;  %v249_v60 = vpop.f32.mrb[5].mxu0 }
 0x135   :  { %v250_v61 = vadd.f32 %v249_v60, %v96_v43  ;;  %v251_v62 = vpop.f32.mrb[6].mxu0  ;;  %460 = vmatprep.mubr.bf16.mxu1 %v293_v58 }
 0x136   :  { %v252_v63 = vadd.f32 %v251_v62, %v92_v42  ;;  %v253_v0 = vpop.f32.mrb[7].mxu0  ;;  %461 = vmatmul.mubr.bf16.vlgmr.msra.gmra.mrb[0].mxu1 %v292_v56  ;;  %v280_v2 = vmax.f32 %v248_v59, 0.0 }
 0x137   :  { %v254_v1 = vadd.f32 %v253_v0, %v96_v43  ;;  %v281_v4 = vmax.f32 %v250_v61, 0.0 }
 0x138   :  { %v282_v3 = vmax.f32 %v252_v63, 0.0 }
 0x139   :  { %v283_v5 = vmax.f32 %v254_v1, 0.0 }
 0x13a   :  { %v294_v6 = vpack.c.bf16 %v282_v3, %v280_v2 }
 0x13b   :  { %v295_v7 = vpack.c.bf16 %v283_v5, %v281_v4  ;;  %v257_v8 = vpop.f32.mrb[8].mxu0 }
 0x13c   :  { %v258_v9 = vadd.f32 %v257_v8, %v92_v42  ;;  %v259_v10 = vpop.f32.mrb[9].mxu0 }
 0x13d   :  { %v260_v11 = vadd.f32 %v259_v10, %v96_v43  ;;  %v261_v12 = vpop.f32.mrb[10].mxu0  ;;  %468 = vmatprep.mubr.bf16.mxu1 %v295_v7 }
 0x13e   :  { %v262_v13 = vadd.f32 %v261_v12, %v92_v42  ;;  %v263_v14 = vpop.f32.mrb[11].mxu0  ;;  %469 = vmatmul.mubr.bf16.gmra.mrb[4].mxu1 %v294_v6  ;;  %v284_v16 = vmax.f32 %v258_v9, 0.0 }
 0x13f   :  { %v264_v15 = vadd.f32 %v263_v14, %v96_v43  ;;  %v285_v18 = vmax.f32 %v260_v11, 0.0 }
 0x140   :  { %v286_v17 = vmax.f32 %v262_v13, 0.0 }
 0x141   :  { %v287_v19 = vmax.f32 %v264_v15, 0.0 }
 0x142   :  { %v296_v20 = vpack.c.bf16 %v286_v17, %v284_v16 }
 0x143   :  { %v297_v21 = vpack.c.bf16 %v287_v19, %v285_v18  ;;  %v267_v22 = vpop.f32.mrb[12].mxu0 }
 0x144   :  { %v268_v23 = vadd.f32 %v267_v22, %v92_v42  ;;  %v269_v24 = vpop.f32.mrb[13].mxu0 }
 0x145   :  { %v270_v25 = vadd.f32 %v269_v24, %v96_v43  ;;  %v271_v26 = vpop.f32.mrb[14].mxu0  ;;  %476 = vmatprep.mubr.bf16.mxu1 %v297_v21 }
 0x146   :  { %v272_v27 = vadd.f32 %v271_v26, %v92_v42  ;;  %v273_v28 = vpop.f32.mrb[15].mxu0  ;;  %477 = vmatmul.mubr.bf16.gmra.mrb[8].mxu1 %v296_v20  ;;  %v288_v30 = vmax.f32 %v268_v23, 0.0 }
 0x147   :  { %v274_v29 = vadd.f32 %v273_v28, %v96_v43  ;;  %v289_v32 = vmax.f32 %v270_v25, 0.0 }
 0x148   :  { %v290_v31 = vmax.f32 %v272_v27, 0.0 }
 0x149   :  { %v291_v33 = vmax.f32 %v274_v29, 0.0 }
 0x14a   :  { %v298_v34 = vpack.c.bf16 %v290_v31, %v288_v30 }
 0x14b   :  { %v299_v35 = vpack.c.bf16 %v291_v33, %v289_v32 }
 0x14d   :  { %484 = vmatprep.mubr.bf16.mxu1 %v299_v35 }
 0x14e   :  { %485 = vmatmul.mubr.bf16.gmra.mrb[12].mxu1 %v298_v34 }
 0x209   :  { %v619_v36 = vpop.f32.mrb[0].mxu1 }
 0x20a   :  { %v620_v37 = vpop.f32.mrb[1].mxu1 }
 0x20b   :  { %v621_v39 = vadd.f32 %v620_v37, %v619_v36  ;;  %v622_v40 = vpop.f32.mrb[2].mxu1 }
 0x20c   :  { %v623_v41 = vpop.f32.mrb[3].mxu1 }
 0x20d   :  { %v504_v42 = vadd.f32 %v621_v39, %v602_v38  ;;  %v624_v44 = vadd.f32 %v623_v41, %v622_v40 }
 0x20f   :  { %512 = vst [vmem:[#allocation8] sm:$0xff] %v504_v42  ;;  %v505_v43 = vadd.f32 %v624_v44, %v602_v38 }
 0x211   :  { %513 = vst [vmem:[#allocation8 + $0x8] sm:$0xff] %v505_v43  ;;  %v625_v45 = vpop.f32.mrb[4].mxu1 }
 0x212   :  { %v626_v46 = vpop.f32.mrb[5].mxu1 }
 0x213   :  { %v627_v47 = vadd.f32 %v626_v46, %v625_v45  ;;  %v628_v48 = vpop.f32.mrb[6].mxu1 }
 0x214   :  { %v629_v49 = vpop.f32.mrb[7].mxu1 }
 0x215   :  { %v506_v50 = vadd.f32 %v627_v47, %v602_v38  ;;  %v630_v51 = vadd.f32 %v629_v49, %v628_v48 }
 0x217   :  { %514 = vst [vmem:[#allocation8 + $0x10] sm:$0xff] %v506_v50  ;;  %v507_v52 = vadd.f32 %v630_v51, %v602_v38 }
 0x219   :  { %515 = vst [vmem:[#allocation8 + $0x18] sm:$0xff] %v507_v52  ;;  %v631_v53 = vpop.f32.mrb[8].mxu1 }
 0x21a   :  { %v632_v54 = vpop.f32.mrb[9].mxu1 }
 0x21b   :  { %v633_v55 = vadd.f32 %v632_v54, %v631_v53  ;;  %v634_v56 = vpop.f32.mrb[10].mxu1 }
 0x21c   :  { %v635_v57 = vpop.f32.mrb[11].mxu1 }
 0x21d   :  { %v508_v58 = vadd.f32 %v633_v55, %v602_v38  ;;  %v636_v59 = vadd.f32 %v635_v57, %v634_v56 }
 0x21f   :  { %516 = vst [vmem:[#allocation8 + $0x20] sm:$0xff] %v508_v58  ;;  %v509_v60 = vadd.f32 %v636_v59, %v602_v38 }
 0x221   :  { %517 = vst [vmem:[#allocation8 + $0x28] sm:$0xff] %v509_v60  ;;  %v637_v61 = vpop.f32.mrb[12].mxu1 }
 0x222   :  { %v638_v62 = vpop.f32.mrb[13].mxu1 }
 0x223   :  { %v639_v63 = vadd.f32 %v638_v62, %v637_v61  ;;  %v640_v0 = vpop.f32.mrb[14].mxu1 }
 0x224   :  { %v641_v1 = vpop.f32.mrb[15].mxu1 }
 0x225   :  { %v510_v2 = vadd.f32 %v639_v63, %v602_v38  ;;  %v642_v3 = vadd.f32 %v641_v1, %v640_v0 }
 0x227   :  { %518 = vst [vmem:[#allocation8 + $0x30] sm:$0xff] %v510_v2  ;;  %v511_v4 = vadd.f32 %v642_v3, %v602_v38 }
 0x229   :  { %519 = vst [vmem:[#allocation8 + $0x38] sm:$0xff] %v511_v4 }
 0x22a   :  { %773 = shalt.err (!%p770_p0)
}
 0x22b   :  { %s774_s14 = scalar_lea.hbm %s898_s5, 1024 }
 0x22c   :  { %p775_p1 = scmp.ne.s32.totalorder %s898_s5, %s774_s14  ;;  %p778_p2 = scmp.lt.u32.totalorder %s774_s14, %s898_s5 }
 0x22e   :  { %p780_p3 = pnand %p778_p2, %p775_p1 }
 0x230   :  { %783 = shalt.err (!%p780_p3)
}
 0x231   :  { %559 = dma.vmem_to_hbm [thread:$0]  %s554_s10, 1024, %s898_s5, [#allocation4], %s791_s28, %s791_s28, %s792_s29  }
 0x232   :  { %788 = dma.done.wait [#allocation4], 1024  }
 0x233   :  { %789 = vsyncadd [#allocation4], 4294966272 }
 0x234   :  { %563 = vsyncpa [#allocation3], 1 }
 0x235   :  { %564 = vsyncpa [#allocation6], 1 }
 0x236   :  { %565 = vsyncpa [#allocation4], 1 }

</bundles_post_ra>
